<compile_context>
chip_gen: v7x
topology: tpu7x:2x2x1
jax: 0.10.0
libtpu: 0.0.40
codegen_flags: <defaults>
</compile_context>

<pallas_src>
import jax
import jax.numpy as jnp
from jax.experimental import pallas as pl
from jax.experimental.pallas import tpu as pltpu


def _diff1_kernel(scale_ref, u_ref, o_ref):
    """(tile_rows, L) tile: two-tap circular stencil along lanes.

    scale_ref: (1,) f32 in SMEM holding 0.5 / dx (kept out of the trace so a
      new dx never forces a recompile, and traced dx values also work).
    u_ref / o_ref: (tile_rows, L) VMEM tiles; the diff axis (L, lanes) stays at
      full extent inside every block, so the circular wrap needs no halo.
    """
    u = u_ref[...]
    L = u.shape[-1]
    # XLU lane rotations (vector-extended slot) instead of concatenate-built
    # shifts: no extra VMEM copies, keeps VPU / load-store slots free.
    u_prev = pltpu.roll(u, shift=1, axis=1)       # u[:, (i - 1) % L]
    u_next = pltpu.roll(u, shift=L - 1, axis=1)   # u[:, (i + 1) % L]
    # Folded arithmetic: one subtract + one scalar multiply (bias is exactly 0).
    o_ref[...] = ((u_next - u_prev) * scale_ref[0]).astype(o_ref.dtype)


def order2_diff1(u, dx, *, max_block_bytes=2 * 1024 * 1024):
    """Pallas equivalent of Order2_Diff1.forward.

    u: (..., x_len) — the module uses (batch, 1, x_len). dx may be a Python
    float or a traced JAX scalar. All leading dims are flattened into "rows";
    rows are tiled along sublanes so Pallas double-buffers the HBM read/write
    streams (overlapping DMA with compute), while the differentiated axis is
    kept whole and lane-dense per block (unmasked stores when x_len % 128 == 0).
    """
    orig_shape = u.shape
    L = int(orig_shape[-1])
    rows = 1
    for d in orig_shape[:-1]:
        rows *= int(d)
    u2d = u.reshape(rows, L)

    # Pick a row tile: ~2 MiB per block keeps double-buffered in+out (~4x the
    # block) comfortably under the scoped-VMEM defaults on v5e/v6e/v7x while
    # still amortizing per-grid-step overhead.
    row_bytes = L * u2d.dtype.itemsize
    if rows * row_bytes <= max_block_bytes:
        tile_rows = rows                                    # single block
    else:
        tile_rows = max(8, min(rows, max_block_bytes // row_bytes) // 8 * 8)
    # Note: for extremely long x_len (8 rows alone exceeding the budget) one
    # would tile the lane axis with 1-element halos instead; not needed here.

    padded_rows = pl.cdiv(rows, tile_rows) * tile_rows
    if padded_rows != rows:
        # Rows are independent, so zero-padding extra rows is semantically inert.
        u2d = jnp.pad(u2d, ((0, padded_rows - rows), (0, 0)))
    grid = (padded_rows // tile_rows,)

    scale = (jnp.float32(0.5) / jnp.asarray(dx, dtype=jnp.float32)).reshape(1)

    out2d = pl.pallas_call(
        _diff1_kernel,
        out_shape=jax.ShapeDtypeStruct((padded_rows, L), u2d.dtype),
        grid=grid,
        in_specs=[
            # 0.5/dx as an SMEM scalar input (no recompile per dx value).
            pl.BlockSpec(memory_space=pltpu.MemorySpace.SMEM),
            pl.BlockSpec((tile_rows, L), lambda i: (i, 0)),
        ],
        out_specs=pl.BlockSpec((tile_rows, L), lambda i: (i, 0)),
        compiler_params=pltpu.CompilerParams(
            # Row tiles are fully independent: shards across the two
            # TensorCores on v7x; harmless no-op on v5e/v6e.
            dimension_semantics=("parallel",),
        ),
    )(scale, u2d)

    if padded_rows != rows:
        out2d = out2d[:rows]
    return out2d.reshape(orig_shape)


if __name__ == "__main__":
    key = jax.random.PRNGKey(0)
    dx = 0.1

    # Case 1: shape implied by the module (batch, 1 channel, x_len).
    u = jax.random.normal(key, (2, 1, 256), dtype=jnp.float32)
    out = jax.block_until_ready(order2_diff1(u, dx))
    ref = (0.5 * jnp.roll(u, -1, axis=-1) - 0.5 * jnp.roll(u, 1, axis=-1)) / dx
    assert out.shape == u.shape and out.dtype == u.dtype
    assert jnp.allclose(out, ref, atol=1e-5, rtol=1e-5)

    # Case 2: exercise the multi-tile (double-buffered / parallel-grid) path.
    u2 = jax.random.normal(jax.random.fold_in(key, 1), (64, 1, 128),
                           dtype=jnp.float32)
    out2 = jax.block_until_ready(order2_diff1(u2, dx, max_block_bytes=8 * 1024))
    ref2 = (0.5 * jnp.roll(u2, -1, axis=-1) - 0.5 * jnp.roll(u2, 1, axis=-1)) / dx
    assert out2.shape == u2.shape and out2.dtype == u2.dtype
    assert jnp.allclose(out2, ref2, atol=1e-5, rtol=1e-5)

    print("KERNEL_OK")
</pallas_src>

<mosaic_0001>
module attributes {stable_mosaic.version = 11 : i64} {
  func.func @_diff1_kernel(%arg0: i32, %arg1: memref<1xf32, #tpu.memory_space<smem>>, %arg2: memref<2x256xf32, #tpu.memory_space<vmem>>, %arg3: memref<2x256xf32, #tpu.memory_space<vmem>>) attributes {dimension_semantics = [#tpu.dimension_semantics<parallel>], iteration_bounds = array<i64: 1>, scalar_prefetch = 0 : i64, scratch_operands = 0 : i64, tpu.core_type = #tpu.core_type<tc>, window_params = [{transform_indices = @transform_0, window_bounds = array<i64: 1>}, {transform_indices = @transform_1, window_bounds = array<i64: 2, 256>}, {transform_indices = @transform_2, window_bounds = array<i64: 2, 256>}]} {
    %c0 = arith.constant 0 : index
    %c0_0 = arith.constant 0 : index
    %0 = vector.load %arg2[%c0, %c0_0] : memref<2x256xf32, #tpu.memory_space<vmem>>, vector<2x256xf32>
    %c1_i32 = arith.constant 1 : i32
    %1 = tpu.dynamic_rotate %0 by %c1_i32 dim 1 : vector<2x256xf32>, i32 -> vector<2x256xf32>
    %c255_i32 = arith.constant 255 : i32
    %2 = tpu.dynamic_rotate %0 by %c255_i32 dim 1 : vector<2x256xf32>, i32 -> vector<2x256xf32>
    %3 = arith.subf %2, %1 : vector<2x256xf32>
    %c0_1 = arith.constant 0 : index
    %4 = memref.load %arg1[%c0_1] : memref<1xf32, #tpu.memory_space<smem>>
    %5 = vector.broadcast %4 : f32 to vector<2x256xf32>
    %6 = arith.mulf %3, %5 : vector<2x256xf32>
    %c0_2 = arith.constant 0 : index
    %c0_3 = arith.constant 0 : index
    %7 = vector.load %arg3[%c0_2, %c0_3] : memref<2x256xf32, #tpu.memory_space<vmem>>, vector<2x256xf32>
    tpu.vector_store %arg3[%c0_2, %c0_3], %6 {strides = array<i32>} : memref<2x256xf32, #tpu.memory_space<vmem>>, vector<2x256xf32>,
    return
  }
  func.func @transform_0(%arg0: i32) -> i32 {
    %c0_i32 = arith.constant 0 : i32
    %c0_i32_0 = arith.constant 0 : i32
    return %c0_i32 : i32
  }
  func.func @transform_1(%arg0: i32) -> (i32, i32) {
    %c0_i32 = arith.constant 0 : i32
    %c0_i32_0 = arith.constant 0 : i32
    return %arg0, %c0_i32 : i32, i32
  }
  func.func @transform_2(%arg0: i32) -> (i32, i32) {
    %c0_i32 = arith.constant 0 : i32
    %c0_i32_0 = arith.constant 0 : i32
    return %arg0, %c0_i32 : i32, i32
  }
}

</mosaic_0001>

<bundles_post_ra>
// kernel: tpu_custom_call.1
= control target key start
LH: loop header
LB: loop body
LE: loop exit
PB: predicated region body
PF: predicated region fallthrough
CT: control target
= control target key end

     0   :  { %8 = vsyncpa [#allocation4], 0  ;;  %s186_s0 = inlined_call_operand.<no memory space> [shape: f32[1], index: 0, kind: input, shape index: {}]   ;;  %s187_s1 = inlined_call_operand.hbm [shape: f32[2,256], index: 1, kind: input, shape index: {}]   ;;  %s188_s2 = inlined_call_operand.hbm [shape: f32[2,256], index: 2, kind: output, shape index: {}]  }
   0x1   :  { %9 = vsyncpa [#allocation5], 0  ;;  %s140_s9 = smov [#allocation3]   ;;  %s92_s13 = scalar_lea.hbm %s187_s1, 64 }
   0x2   :  { %s18_s10 = sshll.u32 %s140_s9, 4  ;;  %p93_p0 = scmp.ne.s32.totalorder %s187_s1, %s92_s13  ;;  %s19_s10 = int_to_ptr.vmem [resolvable:$true] %s18_s10 }
   0x3   :  { %p96_p1 = scmp.lt.u32.totalorder %s92_s13, %s187_s1 }
   0x5   :  { %p98_p2 = pnand %p96_p1, %p93_p0 }
   0x7   :  { %101 = shalt.err (!%p98_p2)
}
   0x8   :  { %s102_s18 = scalar_lea.vmem %s19_s10, 64  ;;  %p107_p4 = scmp.lt.s32.totalorder %s19_s10, %s19_s10 }
   0x9   :  { %p103_p3 = scmp.ne.s32.totalorder %s19_s10, %s102_s18  ;;  %p108_p5 = scmp.lt.s32.totalorder %s102_s18, %s102_s18 }
   0xb   :  { %p109_p6 = por %p108_p5, %p107_p4 }
   0xd   :  { %p110_p7 = pnand %p109_p6, %p103_p3 }
   0xf   :  { %113 = shalt.err (!%p110_p7)
}
  0x10   :  { %21 = dma.hbm_to_vmem [thread:$0]  %s187_s1, 64, %s19_s10, [#allocation4]  }
  0x11   :  { %136 = dma.done.wait [#allocation4], 64  }
  0x12   :  { %137 = vsyncadd [#allocation4], 4294967232  ;;  %v86_v0 = vld.sshfl [vmem:[#allocation3] sm:$0x33 pattern:$0x76325410]  ;;  %v41_v2 = vlaneseq  ;;  %v56_v7 = vstv %s186_s0 }
  0x13   :  { %s141_s21 = smov 127   ;;  %s142_s22 = smov 1   ;;  %v34_v1 = vcombine.high %v86_v0, %v86_v0 }
  0x14   :  { %46 = vrot.lane.b32.xlu1 %v86_v0, %s141_s21  ;;  %37 = vrot.lane.b32.xlu0 %v86_v0, %s142_s22  ;;  %v42_v3 = vand.u32 127, %v41_v2  ;;  %s143_s1 = smov [#allocation6]  }
  0x15   :  { %s77_s25 = sshll.u32 %s143_s1, 4  ;;  %s78_s25 = int_to_ptr.vmem [resolvable:$true] %s77_s25 }
  0x16   :  { %vm50_vm0 = vcmp.lt.s32.totalorder %v42_v3, 127  ;;  %vm43_vm1 = vcmp.lt.s32.totalorder %v42_v3, 1  ;;  %s114_s26 = scalar_lea.vmem %s78_s25, 64  ;;  %p119_p9 = scmp.lt.s32.totalorder %s78_s25, %s78_s25 }
  0x17   :  { %p115_p8 = scmp.ne.s32.totalorder %s78_s25, %s114_s26  ;;  %p120_p10 = scmp.lt.s32.totalorder %s114_s26, %s114_s26 }
  0x18   :  { %48 = vrot.lane.b32.xlu1 %v34_v1, %s141_s21  ;;  %39 = vrot.lane.b32.xlu0 %v34_v1, %s142_s22 }
  0x19   :  { %p121_p11 = por %p120_p10, %p119_p9 }
  0x1b   :  { %p122_p12 = pnand %p121_p11, %p115_p8 }
  0x86   :  { %v47_v4 = vpop.permute.xlu1 %46  ;;  %v38_v5 = vpop.permute.xlu0 %37 }
  0x8a   :  { %v49_v6 = vpop.permute.xlu1 %48  ;;  %v40_v8 = vpop.permute.xlu0 %39 }
  0x8b   :  { %v51_v9 = vsel %vm50_vm0, %v47_v4, %v49_v6  ;;  %v52_v10 = vsel %vm50_vm0, %v49_v6, %v47_v4  ;;  %v44_v11 = vsel %vm43_vm1, %v38_v5, %v40_v8  ;;  %v45_v12 = vsel %vm43_vm1, %v40_v8, %v38_v5 }
  0x8c   :  { %v53_v13 = vsub.f32 %v51_v9, %v45_v12  ;;  %v54_v14 = vsub.f32 %v52_v10, %v44_v11 }
  0x8e   :  { %v57_v15 = vmul.f32 %v56_v7, %v53_v13  ;;  %v58_v16 = vmul.f32 %v56_v7, %v54_v14 }
  0x90   :  { %v61_v17 = vcombine.low %v57_v15, %v58_v16 }
  0x92   :  { %87 = vst.sshfl [vmem:[#allocation6] sm:$0x33 pattern:$0x76325410] %v61_v17 }
  0x93   :  { %125 = shalt.err (!%p122_p12)
}
  0x94   :  { %s126_s28 = scalar_lea.hbm %s188_s2, 64 }
  0x95   :  { %p127_p13 = scmp.ne.s32.totalorder %s188_s2, %s126_s28  ;;  %p130_p0 = scmp.lt.u32.totalorder %s126_s28, %s188_s2 }
  0x97   :  { %p132_p1 = pnand %p130_p0, %p127_p13 }
  0x99   :  { %135 = shalt.err (!%p132_p1)
}
  0x9a   :  { %80 = dma.vmem_to_hbm [thread:$0]  %s78_s25, 64, %s188_s2, [#allocation5]  }
  0x9b   :  { %138 = dma.done.wait [#allocation5], 64  }
  0x9c   :  { %139 = vsyncadd [#allocation5], 4294967232 }
  0x9d   :  { %84 = vsyncpa [#allocation4], 1 }
  0x9e   :  { %85 = vsyncpa [#allocation5], 1 }

</bundles_post_ra>
